<compile_context>
chip_gen: v6e
topology: v6e:2x2x1
jax: 0.10.0
libtpu: 0.0.40
codegen_flags: <defaults>
</compile_context>

<pallas_src>
import jax
import jax.numpy as jnp
from jax.experimental import pallas as pl
from jax.experimental.pallas import tpu as pltpu


def _round_up(x: int, m: int) -> int:
    return (x + m - 1) // m * m


def _make_si_sdr_kernel(true_l: int, block_rows: int, block_l: int,
                        need_l_mask: bool):
    """Build the kernel with static tiling / masking config baked in."""

    def kernel(x_ref, y_ref, out_ref, xy_acc, yy_acc, xx_acc):
        # Grid = (row_blocks, l_blocks); axis 1 (L) is the reduction axis.
        k = pl.program_id(1)

        @pl.when(k == 0)
        def _init():
            xy_acc[...] = jnp.zeros_like(xy_acc)
            yy_acc[...] = jnp.zeros_like(yy_acc)
            xx_acc[...] = jnp.zeros_like(xx_acc)

        x = x_ref[...].astype(jnp.float32)
        y = y_ref[...].astype(jnp.float32)

        if need_l_mask:
            # Only needed when L > block_l and L % block_l != 0: zero the
            # out-of-range lanes of the (ragged) last L block.  Zeroed lanes
            # contribute 0 to all three dot products.
            lane = jax.lax.broadcasted_iota(jnp.int32, (block_rows, block_l), 1)
            valid = (k * block_l + lane) < true_l
            x = jnp.where(valid, x, 0.0)
            y = jnp.where(valid, y, 0.0)

        # Three row-wise partial dot products (keepdims -> stay 2-D).
        xy_acc[...] += jnp.sum(x * y, axis=-1, keepdims=True)
        yy_acc[...] += jnp.sum(y * y, axis=-1, keepdims=True)
        xx_acc[...] += jnp.sum(x * x, axis=-1, keepdims=True)

        @pl.when(k == pl.num_programs(1) - 1)
        def _finalize():
            xy = xy_acc[...]
            yy = yy_acc[...]
            xx = xx_acc[...]
            alpha = xy / (yy + 1e-6)                       # (rows, 1)
            num = alpha * alpha * yy + 1e-6
            # ||alpha*y - x||^2 expanded; clamp to >= 0 against f32
            # cancellation for near-perfect (high-SDR) rows.
            den_raw = alpha * alpha * yy - 2.0 * alpha * xy + xx
            den = jnp.maximum(den_raw, 0.0) + 1e-6
            # -10 * log10(num / den)
            out_ref[...] = (-10.0 / jnp.log(10.0)) * jnp.log(num / den)

    return kernel


def si_sdr_loss(inp, label, *, num_batch_dim: int = 3,
                target_tile_bytes: int = 6 << 20,
                max_block_l: int = 8192,
                max_block_rows: int = 1024,
                vmem_limit_bytes: int = 48 * 1024 * 1024):
    """Pallas SI-SDR loss. Returns a float32 scalar (mean over batch rows)."""
    assert num_batch_dim in (2, 3), "only support 2 or 3"
    assert inp.shape == label.shape, "inputs must have the same shape"
    assert inp.ndim == num_batch_dim

    if num_batch_dim == 3:
        b, s, l = inp.shape
        inp = inp.reshape(b * s, l)
        label = label.reshape(b * s, l)

    n, L = inp.shape
    itemsize = jnp.dtype(inp.dtype).itemsize
    # Sublane packing: f32 -> 8 rows/vreg, bf16 -> 16, int8/fp8 -> 32.
    row_mult = max(8, 32 // itemsize)

    # ---- L (lane) blocking: no input padding ----
    if L <= max_block_l:
        block_l = L                       # full-dim block: always legal, no mask
    else:
        block_l = max_block_l             # multiple of 128; mask ragged last block
    l_blocks = pl.cdiv(L, block_l)
    need_l_mask = (l_blocks > 1) and (L % block_l != 0)

    # ---- row (sublane) blocking ----
    rows_target = target_tile_bytes // max(1, block_l * itemsize)
    rows_target = max(row_mult, min(max_block_rows, rows_target))
    if n < 2 * row_mult:
        block_rows = n                    # tiny batch: one full-dim block
    else:
        # multiple of row_mult, capped, and >= 2 row blocks (v7x megacore).
        block_rows = min(_round_up(pl.cdiv(n, 2), row_mult),
                         _round_up(rows_target, row_mult))
    row_blocks = pl.cdiv(n, block_rows)
    n_out = row_blocks * block_rows       # >= n; extra rows are dropped below

    kernel = _make_si_sdr_kernel(L, block_rows, block_l, need_l_mask)

    out = pl.pallas_call(
        kernel,
        out_shape=jax.ShapeDtypeStruct((n_out, 1), jnp.float32),
        grid_spec=pltpu.PrefetchScalarGridSpec(
            num_scalar_prefetch=0,
            grid=(row_blocks, l_blocks),
            in_specs=[
                pl.BlockSpec((block_rows, block_l), lambda i, k: (i, k)),
                pl.BlockSpec((block_rows, block_l), lambda i, k: (i, k)),
            ],
            out_specs=pl.BlockSpec((block_rows, 1), lambda i, k: (i, 0)),
            scratch_shapes=[
                pltpu.VMEM((block_rows, 1), jnp.float32),
                pltpu.VMEM((block_rows, 1), jnp.float32),
                pltpu.VMEM((block_rows, 1), jnp.float32),
            ],
        ),
        compiler_params=pltpu.CompilerParams(
            # rows -> parallel (megacore on v7x), L -> reduction.
            dimension_semantics=("parallel", "arbitrary"),
            vmem_limit_bytes=vmem_limit_bytes,
        ),
    )(inp, label)

    # Rows [n:n_out] come from out-of-bounds (garbage) input rows of the last
    # partial row block; drop them before the mean.
    return jnp.sum(out[:n, 0]) / jnp.float32(n)


def _reference_si_sdr(inp, label, num_batch_dim=3):
    """Pure-JAX reference mirroring the PyTorch forward."""
    if num_batch_dim == 3:
        b, s, l = inp.shape
        inp = inp.reshape(b * s, l)
        label = label.reshape(b * s, l)
    inp = inp.astype(jnp.float32)
    label = label.astype(jnp.float32)
    term1 = jnp.sum(inp * label, axis=-1)
    term2 = jnp.sum(label * label, axis=-1)
    alpha = term1 / (term2 + 1e-6)
    term3 = alpha[:, None] * label - inp
    term4 = jnp.sum(term3 * term3, axis=-1) + 1e-6
    loss = -10.0 * jnp.log10((alpha ** 2 * term2 + 1e-6) / term4)
    return jnp.mean(loss, axis=0)


if __name__ == "__main__":
    key = jax.random.PRNGKey(0)
    k1, k2, k3, k4, k5, k6 = jax.random.split(key, 6)

    # Case 1: (B, S, L) = (2, 8, 256) -> 16 rows, aligned L, 2 row blocks.
    B, S, L = 2, 8, 256
    est3 = jax.random.normal(k1, (B, S, L), dtype=jnp.float32)
    ref3 = jax.random.normal(k2, (B, S, L), dtype=jnp.float32)
    loss3 = jax.block_until_ready(si_sdr_loss(est3, ref3, num_batch_dim=3))
    exp3 = _reference_si_sdr(est3, ref3, num_batch_dim=3)
    assert jnp.allclose(loss3, exp3, rtol=1e-3, atol=1e-3), (loss3, exp3)

    # Case 2: (B, L) = (5, 300) -> tiny batch, non-128-aligned L, single block.
    est2 = jax.random.normal(k3, (5, 300), dtype=jnp.float32)
    ref2 = jax.random.normal(k4, (5, 300), dtype=jnp.float32)
    loss2 = jax.block_until_ready(si_sdr_loss(est2, ref2, num_batch_dim=2))
    exp2 = _reference_si_sdr(est2, ref2, num_batch_dim=2)
    assert jnp.allclose(loss2, exp2, rtol=1e-3, atol=1e-3), (loss2, exp2)

    # Case 3: (B, L) = (20, 8200) -> exercises the no-pad ragged paths:
    # ragged last L block (lane mask) and ragged last row block (dropped rows).
    est1 = jax.random.normal(k5, (20, 8200), dtype=jnp.float32)
    ref1 = jax.random.normal(k6, (20, 8200), dtype=jnp.float32)
    loss1 = jax.block_until_ready(si_sdr_loss(est1, ref1, num_batch_dim=2))
    exp1 = _reference_si_sdr(est1, ref1, num_batch_dim=2)
    assert jnp.allclose(loss1, exp1, rtol=1e-3, atol=1e-3), (loss1, exp1)

    print("KERNEL_OK")
</pallas_src>

<mosaic_0001>
module attributes {stable_mosaic.version = 11 : i64} {
  func.func @kernel(%arg0: i32, %arg1: i32, %arg2: memref<8x256xf32, #tpu.memory_space<vmem>>, %arg3: memref<8x256xf32, #tpu.memory_space<vmem>>, %arg4: memref<8x1xf32, #tpu.memory_space<vmem>>, %arg5: memref<8x1xf32, #tpu.memory_space<vmem>>, %arg6: memref<8x1xf32, #tpu.memory_space<vmem>>, %arg7: memref<8x1xf32, #tpu.memory_space<vmem>>) attributes {dimension_semantics = [#tpu.dimension_semantics<parallel>, #tpu.dimension_semantics<arbitrary>], iteration_bounds = array<i64: 2, 1>, scalar_prefetch = 0 : i64, scratch_operands = 3 : i64, tpu.core_type = #tpu.core_type<tc>, window_params = [{transform_indices = @transform_0, window_bounds = array<i64: 8, 256>}, {transform_indices = @transform_1, window_bounds = array<i64: 8, 256>}, {transform_indices = @transform_2, window_bounds = array<i64: 8, 1>}]} {
    %c0_i32 = arith.constant 0 : i32
    %0 = arith.cmpi eq, %arg1, %c0_i32 : i32
    %1 = arith.extui %0 : i1 to i32
    %c0_i32_0 = arith.constant 0 : i32
    %2 = arith.cmpi ne, %1, %c0_i32_0 : i32
    scf.if %2 {
      %cst_20 = arith.constant 0.000000e+00 : f32
      %26 = vector.broadcast %cst_20 : f32 to vector<8x1xf32>
      %c0_21 = arith.constant 0 : index
      %c0_22 = arith.constant 0 : index
      %27 = vector.load %arg5[%c0_21, %c0_22] : memref<8x1xf32, #tpu.memory_space<vmem>>, vector<8x1xf32>
      tpu.vector_store %arg5[%c0_21, %c0_22], %26 {strides = array<i32>} : memref<8x1xf32, #tpu.memory_space<vmem>>, vector<8x1xf32>,
      %cst_23 = arith.constant 0.000000e+00 : f32
      %28 = vector.broadcast %cst_23 : f32 to vector<8x1xf32>
      %c0_24 = arith.constant 0 : index
      %c0_25 = arith.constant 0 : index
      %29 = vector.load %arg6[%c0_24, %c0_25] : memref<8x1xf32, #tpu.memory_space<vmem>>, vector<8x1xf32>
      tpu.vector_store %arg6[%c0_24, %c0_25], %28 {strides = array<i32>} : memref<8x1xf32, #tpu.memory_space<vmem>>, vector<8x1xf32>,
      %cst_26 = arith.constant 0.000000e+00 : f32
      %30 = vector.broadcast %cst_26 : f32 to vector<8x1xf32>
      %c0_27 = arith.constant 0 : index
      %c0_28 = arith.constant 0 : index
      %31 = vector.load %arg7[%c0_27, %c0_28] : memref<8x1xf32, #tpu.memory_space<vmem>>, vector<8x1xf32>
      tpu.vector_store %arg7[%c0_27, %c0_28], %30 {strides = array<i32>} : memref<8x1xf32, #tpu.memory_space<vmem>>, vector<8x1xf32>,
    } else {
    }
    %c0 = arith.constant 0 : index
    %c0_1 = arith.constant 0 : index
    %3 = vector.load %arg2[%c0, %c0_1] : memref<8x256xf32, #tpu.memory_space<vmem>>, vector<8x256xf32>
    %c0_2 = arith.constant 0 : index
    %c0_3 = arith.constant 0 : index
    %4 = vector.load %arg3[%c0_2, %c0_3] : memref<8x256xf32, #tpu.memory_space<vmem>>, vector<8x256xf32>
    %c0_4 = arith.constant 0 : index
    %c0_5 = arith.constant 0 : index
    %5 = vector.load %arg5[%c0_4, %c0_5] : memref<8x1xf32, #tpu.memory_space<vmem>>, vector<8x1xf32>
    %6 = arith.mulf %3, %4 : vector<8x256xf32>
    %cst = arith.constant dense<0.000000e+00> : vector<8xf32>
    %7 = vector.multi_reduction <add>, %6, %cst [1] : vector<8x256xf32> to vector<8xf32>
    %8 = vector.shape_cast %7 : vector<8xf32> to vector<8x1xf32>
    %9 = arith.addf %5, %8 : vector<8x1xf32>
    %c0_6 = arith.constant 0 : index
    %c0_7 = arith.constant 0 : index
    %10 = vector.load %arg5[%c0_6, %c0_7] : memref<8x1xf32, #tpu.memory_space<vmem>>, vector<8x1xf32>
    tpu.vector_store %arg5[%c0_6, %c0_7], %9 {strides = array<i32>} : memref<8x1xf32, #tpu.memory_space<vmem>>, vector<8x1xf32>,
    %c0_8 = arith.constant 0 : index
    %c0_9 = arith.constant 0 : index
    %11 = vector.load %arg6[%c0_8, %c0_9] : memref<8x1xf32, #tpu.memory_space<vmem>>, vector<8x1xf32>
    %12 = arith.mulf %4, %4 : vector<8x256xf32>
    %cst_10 = arith.constant dense<0.000000e+00> : vector<8xf32>
    %13 = vector.multi_reduction <add>, %12, %cst_10 [1] : vector<8x256xf32> to vector<8xf32>
    %14 = vector.shape_cast %13 : vector<8xf32> to vector<8x1xf32>
    %15 = arith.addf %11, %14 : vector<8x1xf32>
    %c0_11 = arith.constant 0 : index
    %c0_12 = arith.constant 0 : index
    %16 = vector.load %arg6[%c0_11, %c0_12] : memref<8x1xf32, #tpu.memory_space<vmem>>, vector<8x1xf32>
    tpu.vector_store %arg6[%c0_11, %c0_12], %15 {strides = array<i32>} : memref<8x1xf32, #tpu.memory_space<vmem>>, vector<8x1xf32>,
    %c0_13 = arith.constant 0 : index
    %c0_14 = arith.constant 0 : index
    %17 = vector.load %arg7[%c0_13, %c0_14] : memref<8x1xf32, #tpu.memory_space<vmem>>, vector<8x1xf32>
    %18 = arith.mulf %3, %3 : vector<8x256xf32>
    %cst_15 = arith.constant dense<0.000000e+00> : vector<8xf32>
    %19 = vector.multi_reduction <add>, %18, %cst_15 [1] : vector<8x256xf32> to vector<8xf32>
    %20 = vector.shape_cast %19 : vector<8xf32> to vector<8x1xf32>
    %21 = arith.addf %17, %20 : vector<8x1xf32>
    %c0_16 = arith.constant 0 : index
    %c0_17 = arith.constant 0 : index
    %22 = vector.load %arg7[%c0_16, %c0_17] : memref<8x1xf32, #tpu.memory_space<vmem>>, vector<8x1xf32>
    tpu.vector_store %arg7[%c0_16, %c0_17], %21 {strides = array<i32>} : memref<8x1xf32, #tpu.memory_space<vmem>>, vector<8x1xf32>,
    %c0_i32_18 = arith.constant 0 : i32
    %23 = arith.cmpi eq, %arg1, %c0_i32_18 : i32
    %24 = arith.extui %23 : i1 to i32
    %c0_i32_19 = arith.constant 0 : i32
    %25 = arith.cmpi ne, %24, %c0_i32_19 : i32
    scf.if %25 {
      %c0_20 = arith.constant 0 : index
      %c0_21 = arith.constant 0 : index
      %26 = vector.load %arg5[%c0_20, %c0_21] : memref<8x1xf32, #tpu.memory_space<vmem>>, vector<8x1xf32>
      %c0_22 = arith.constant 0 : index
      %c0_23 = arith.constant 0 : index
      %27 = vector.load %arg6[%c0_22, %c0_23] : memref<8x1xf32, #tpu.memory_space<vmem>>, vector<8x1xf32>
      %c0_24 = arith.constant 0 : index
      %c0_25 = arith.constant 0 : index
      %28 = vector.load %arg7[%c0_24, %c0_25] : memref<8x1xf32, #tpu.memory_space<vmem>>, vector<8x1xf32>
      %cst_26 = arith.constant 9.99999997E-7 : f32
      %29 = vector.broadcast %cst_26 : f32 to vector<8x1xf32>
      %30 = arith.addf %27, %29 : vector<8x1xf32>
      %31 = arith.divf %26, %30 : vector<8x1xf32>
      %32 = arith.mulf %31, %31 : vector<8x1xf32>
      %33 = arith.mulf %32, %27 : vector<8x1xf32>
      %cst_27 = arith.constant 9.99999997E-7 : f32
      %34 = vector.broadcast %cst_27 : f32 to vector<8x1xf32>
      %35 = arith.addf %33, %34 : vector<8x1xf32>
      %36 = arith.mulf %31, %31 : vector<8x1xf32>
      %37 = arith.mulf %36, %27 : vector<8x1xf32>
      %cst_28 = arith.constant 2.000000e+00 : f32
      %38 = vector.broadcast %cst_28 : f32 to vector<8x1xf32>
      %39 = arith.mulf %38, %31 : vector<8x1xf32>
      %40 = arith.mulf %39, %26 : vector<8x1xf32>
      %41 = arith.subf %37, %40 : vector<8x1xf32>
      %42 = arith.addf %41, %28 : vector<8x1xf32>
      %cst_29 = arith.constant 0.000000e+00 : f32
      %43 = vector.broadcast %cst_29 : f32 to vector<8x1xf32>
      %44 = arith.maximumf %42, %43 : vector<8x1xf32>
      %cst_30 = arith.constant 9.99999997E-7 : f32
      %45 = vector.broadcast %cst_30 : f32 to vector<8x1xf32>
      %46 = arith.addf %44, %45 : vector<8x1xf32>
      %cst_31 = arith.constant 1.000000e+01 : f32
      %47 = math.log %cst_31 : f32
      %cst_32 = arith.constant -1.000000e+01 : f32
      %48 = arith.divf %cst_32, %47 : f32
      %49 = arith.divf %35, %46 : vector<8x1xf32>
      %50 = math.log %49 : vector<8x1xf32>
      %51 = vector.broadcast %48 : f32 to vector<8x1xf32>
      %52 = arith.mulf %51, %50 : vector<8x1xf32>
      %c0_33 = arith.constant 0 : index
      %c0_34 = arith.constant 0 : index
      %53 = vector.load %arg4[%c0_33, %c0_34] : memref<8x1xf32, #tpu.memory_space<vmem>>, vector<8x1xf32>
      tpu.vector_store %arg4[%c0_33, %c0_34], %52 {strides = array<i32>} : memref<8x1xf32, #tpu.memory_space<vmem>>, vector<8x1xf32>,
    } else {
    }
    return
  }
  func.func @transform_0(%arg0: i32, %arg1: i32) -> (i32, i32) {
    %c0_i32 = arith.constant 0 : i32
    return %arg0, %arg1 : i32, i32
  }
  func.func @transform_1(%arg0: i32, %arg1: i32) -> (i32, i32) {
    %c0_i32 = arith.constant 0 : i32
    return %arg0, %arg1 : i32, i32
  }
  func.func @transform_2(%arg0: i32, %arg1: i32) -> (i32, i32) {
    %c0_i32 = arith.constant 0 : i32
    %c0_i32_0 = arith.constant 0 : i32
    return %arg0, %c0_i32 : i32, i32
  }
}

</mosaic_0001>

<bundles_post_ra>
// kernel: tpu_custom_call.1
= control target key start
LH: loop header
LB: loop body
LE: loop exit
PB: predicated region body
PF: predicated region fallthrough
CT: control target
= control target key end

     0   :  { %7 = vsyncpa [#allocation6], 0  ;;  %s731_s0 = inlined_call_operand.hbm [shape: f32[16,256], index: 0, kind: input, shape index: {}]   ;;  %s732_s1 = inlined_call_operand.hbm [shape: f32[16,256], index: 1, kind: input, shape index: {}]   ;;  %s733_s2 = inlined_call_operand.vmem [shape: f32[16,1], index: 2, kind: output, shape index: {}]  }
   0x1   :  { %9 = vsyncpa [#allocation6 + $0x1], 0 }
   0x2   :  { %10 = vsyncpa [#allocation8], 0 }
   0x3   :  { %12 = vsyncpa [#allocation8 + $0x1], 0  ;;  %s598_s9 = smov 0   ;;  %s600_s10 = smov 0  }
   0x4   :  { %s602_s11 = smov 0   ;;  %s604_s12 = smov 0  }
   0x5   :  { %s606_s13 = smov 0   ;;  %s608_s14 = smov 0  }
   0x6 LB: > { %s383_s15 = sadd.s32 4294967295, %s578_s14   ;;  %s30_s16 = sadd.s32 1, %s574_s13  ;;  %s578_s14 = sphi %s608_s14, %s18_s14   ;;  %s574_s13 = sphi %s606_s13, %s742_s13   ;;  %s570_s12 = sphi %s604_s12, %s741_s12   ;;  %s566_s11 = sphi %s602_s11, %s740_s11   ;;  %s562_s10 = sphi %s600_s10, %s739_s10   ;;  %s558_s9 = sphi %s598_s9, %s738_s9  }
   0x7   : > { %p32_p0 = scmp.ge.s32.totalorder %s30_s16, 2  ;;  %s39_s17 = sadd.s32 1, %s566_s11 }
   0x8   : > { %p46_p1 = scmp.ne.s32.totalorder %s566_s11, %s562_s10  ;;  %p47_p2 = scmp.eq.s32.totalorder %s578_s14, 0 }
   0x9   : > { %s744_s16 = smov (%p32_p0, %s30_s16), 0  ;;  %p52_p4 = scmp.ne.s32.totalorder %s562_s10, %s558_s9 }
   0xa   : > { %p634_p3 = por %p47_p2, %p46_p1  ;;  %s34_s19 = ssub.s32 %s574_s13, %s744_s16 }
   0xb   : > { %p53_p5 = scmp.eq.s32.totalorder %s383_s15, 0  ;;  %p37_p6 = scmp.eq.s32.totalorder %s34_s19, 0 }
   0xc   : > { %p412_p8 = scmp.lt.s32.totalorder %s578_s14, 2  ;;  %s650_s22 = sand.u32 1, %s566_s11  }
   0xd   : > { %p641_p7 = por %p53_p5, %p52_p4  ;;  %s399_s23 = sshll.u32 %s574_s13, 8 }
   0xe   : > { %s647_s21 = scalar_select %p37_p6, %s566_s11, %s39_s17  }
   0xf   : > { %s387_s24 = sshll.u32 %s650_s22, 4  ;;  %s142_s27 = scalar_lea.hbm %s731_s0, %s399_s23 }
  0x10   : > { %s134_s28 = scalar_lea.vmem [#allocation5], %s387_s24  ;;  %p659_p9 = pnand %p412_p8, %p634_p3 }
  0x11   : > { %s144_s29 = sshll.u32 %s134_s28, 4  ;;  %p393_p10 = scmp.ge.s32.totalorder %s578_s14, 1  ;;  %s145_s29 = int_to_ptr.vmem [resolvable:$true] %s144_s29 }
  0x12   : > { %p170_p11 = scmp.lt.s32.totalorder %s578_s14, 3  ;;  %s131_s3 = scalar_lea.sflag [#allocation6], %s650_s22 }
  0x13   : > { %p470_p12 = pneg %p659_p9  ;;  %s481_s4 = scalar_lea.vmem %s145_s29, 256 }
  0x14   : > { %p482_p13 = scmp.ne.s32.totalorder %s145_s29, %s481_s4  ;;  %s580_s5 = smov [#allocation5]  }
  0x15   : > { %s486_s6 = sshll.u32 %s580_s5, 4  ;;  %s487_s6 = int_to_ptr.vmem [resolvable:$false] %s486_s6 }
  0x16   : > { %p484_p0 = pnand %p482_p13, %p470_p12  ;;  %s488_s7 = scalar_lea.vmem %s487_s6, 512 }
  0x17   : > { %p489_p2 = scmp.lt.s32.totalorder %s145_s29, %s487_s6  ;;  %p490_p3 = scmp.lt.s32.totalorder %s488_s7, %s481_s4 }
  0x18   : > { %p485_p1 = pneg %p484_p0 }
  0x19   : > { %p491_p4 = por %p490_p3, %p489_p2 }
  0x1b   : > { %p492_p5 = pnand %p491_p4, %p485_p1 }
  0x1d   : > { %495 = shalt.err (!%p492_p5)
}
  0x1e   : > { %408 = dma.hbm_to_vmem [thread:$0]  (!%p659_p9), %s142_s27, 256, %s145_s29, %s131_s3  }
  0x1f   : > { %p677_p6 = pnand %p393_p10, %p170_p11  ;;  %s163_s17 = scalar_lea.hbm %s732_s1, %s399_s23 }
  0x20   : > { %s155_s18 = scalar_lea.vmem [#allocation7], %s387_s24  ;;  %s152_s25 = scalar_lea.sflag [#allocation8], %s650_s22 }
  0x21   : > { %s165_s19 = sshll.u32 %s155_s18, 4  ;;  %s581_s27 = smov [#allocation7]   ;;  %s166_s19 = int_to_ptr.vmem [resolvable:$true] %s165_s19 }
  0x22   : > { %s509_s26 = scalar_lea.vmem %s166_s19, 256  ;;  %s514_s28 = sshll.u32 %s581_s27, 4  ;;  %s515_s28 = int_to_ptr.vmem [resolvable:$false] %s514_s28 }
  0x23   : > { %p510_p8 = scmp.ne.s32.totalorder %s166_s19, %s509_s26  ;;  %s516_s29 = scalar_lea.vmem %s515_s28, 512 }
  0x24   : > { %p517_p10 = scmp.lt.s32.totalorder %s166_s19, %s515_s28  ;;  %p518_p11 = scmp.lt.s32.totalorder %s516_s29, %s509_s26 }
  0x25   : > { %p512_p13 = pnand %p510_p8, %p470_p12 }
  0x26   : > { %p519_p1 = por %p518_p11, %p517_p10 }
  0x27   : > { %p513_p0 = pneg %p512_p13 }
  0x29   : > { %p520_p2 = pnand %p519_p1, %p513_p0 }
  0x2b   : > { %523 = shalt.err (!%p520_p2)
}
  0x2c   : > { %411 = dma.hbm_to_vmem [thread:$0]  (!%p659_p9), %s163_s17, 256, %s166_s19, %s152_s25  }
  0x2d   : > { %174 = sbr.rel (%p677_p6) target bundleno = 271 (0x10f), region = 28  ;;  %s176_s22 = sand.u32 (!%p677_p6), 1, %s562_s10  }
  0x2e   : > { %s394_s23 = sshll.u32 (!%p677_p6), %s176_s22, 4  ;;  %s177_s24 = scalar_lea.sflag (!%p677_p6), [#allocation6], %s176_s22 }
  0x2f   : > { %s180_s3 = scalar_lea.vmem (!%p677_p6), [#allocation5], %s394_s23 }
  0x32   : > { %549 = dma.done.wait (%p641_p7), %s177_s24, 256  }
  0x33   : > { %551 = vsyncadd (%p641_p7), %s177_s24, 4294967040  ;;  %s186_s4 = scalar_lea.sflag [#allocation8], %s176_s22  ;;  %s189_s5 = scalar_lea.vmem [#allocation7], %s394_s23 }
  0x34   : > { %553 = dma.done.wait (%p641_p7), %s186_s4, 256  }
  0x35   : > { %555 = vsyncadd (%p641_p7), %s186_s4, 4294967040  ;;  %vm224_vm0 = vcmask 7168   ;;  %v582_v0 = vmov 0.0   ;;  %v230_v1 = vld [vmem:[%s189_s5] sm:$0xff]  ;;  %v231_v2 = vld [vmem:[%s189_s5 + $0x8] sm:$0xff]  ;;  %p216_p7 = scmp.lt.s32.totalorder %s570_s12, 1 }
  0x36   : > { %226 = vst.msk [vmem:[#allocation3] sm:$0xff] %vm224_vm0, %v582_v0  ;;  %225 = vst.msk [vmem:[#allocation2] sm:$0xff] %vm224_vm0, %v582_v0  ;;  %v228_v3 = vld [vmem:[%s180_s3] sm:$0xff]  ;;  %v242_v4 = vmul.f32 %v230_v1, %v230_v1  ;;  %v243_v5 = vmul.f32 %v231_v2, %v231_v2  ;;  %v229_v6 = vld [vmem:[%s180_s3 + $0x8] sm:$0xff] }
  0x37   : > { %227 = vst.msk [vmem:[#allocation4] sm:$0xff] %vm224_vm0, %v582_v0  ;;  %v233_v7 = vmul.f32 %v230_v1, %v228_v3  ;;  %v250_v8 = vmul.f32 %v228_v3, %v228_v3  ;;  %v234_v9 = vmul.f32 %v231_v2, %v229_v6  ;;  %v251_v10 = vmul.f32 %v229_v6, %v229_v6  ;;  %s746_s12 = smov (!%p216_p7, %s570_s12), 1 }
  0x38   : > { %v244_v11 = vadd.f32 %v243_v5, %v242_v4  ;;  %s396_s20 = sshll.u32 %s746_s12, 3 }
  0x39   : > { %v252_v12 = vadd.f32 %v251_v10, %v250_v8  ;;  %v235_v13 = vadd.f32 %v234_v9, %v233_v7  ;;  %s219_s7 = scalar_lea.vmem %s733_s2, %s396_s20 }
  0x3a   : > { %245 = vadd.xlane.f32.xlu0 %v244_v11 }
  0x3b   : > { %253 = vadd.xlane.f32.xlu1 %v252_v12 }
  0x3d   : > { %v241_v14 = vld [vmem:[#allocation3] sm:$0xff]  ;;  %v232_v19 = vld [vmem:[#allocation2] sm:$0xff] }
  0x3e   : > { %236 = vadd.xlane.f32.xlu0 %v235_v13  ;;  %v249_v15 = vld [vmem:[#allocation4] sm:$0xff] }
  0xc3   : > { %v246_v16 = vpop.xlane.xlu0 %245 }
  0xc4   : > { %v247_v17 = vadd.f32 %v246_v16, %v241_v14  ;;  %v254_v18 = vpop.xlane.xlu1 %253 }
  0xc5   : > { %v255_v20 = vadd.f32 %v254_v18, %v249_v15 }
  0xc6   : > { %248 = vst.msk [vmem:[#allocation3] sm:$0xff] %vm224_vm0, %v247_v17 }
  0xc7   : > { %v237_v21 = vpop.xlane.xlu0 %236  ;;  %256 = vst.msk [vmem:[#allocation4] sm:$0xff] %vm224_vm0, %v255_v20 }
  0xc8   : > { %v238_v22 = vadd.f32 %v237_v21, %v232_v19 }
  0xca   : > { %240 = vst.msk [vmem:[#allocation2] sm:$0xff] %vm224_vm0, %v238_v22 }
  0xcd   : > { %v261_v23 = vld [vmem:[#allocation3] sm:$0xff] }
  0xce   : > { %v263_v24 = vadd.f32 1e-06, %v261_v23  ;;  %v262_v32 = vld [vmem:[#allocation4] sm:$0xff] }
  0xd0   : > { %462 = vrcp.f32 %v263_v24 }
  0xd1   : > { %v260_v25 = vld [vmem:[#allocation2] sm:$0xff] }
  0xdd   : > { %v463_v26 = vpop.eup %462 }
  0xde   : > { %v265_v27 = vmul.f32 %v463_v26, %v260_v25 }
  0xe0   : > { %v266_v28 = vmul.f32 %v265_v27, %v265_v27  ;;  %v269_v29 = vmul.f32 2.0, %v265_v27 }
  0xe2   : > { %v270_v30 = vmul.f32 %v269_v29, %v260_v25  ;;  %v267_v31 = vmul.f32 %v266_v28, %v261_v23 }
  0xe4   : > { %v271_v33 = vsub.f32 %v267_v31, %v270_v30  ;;  %v268_v37 = vadd.f32 1e-06, %v267_v31 }
  0xe6   : > { %v272_v34 = vadd.f32 %v271_v33, %v262_v32 }
  0xe8   : > { %v273_v35 = vmax.f32 %v272_v34, 0.0 }
  0xea   : > { %v274_v36 = vadd.f32 1e-06, %v273_v35 }
  0xec   : > { %464 = vrcp.f32 %v274_v36 }
  0xf9   : > { %v465_v38 = vpop.eup %464 }
  0xfa   : > { %v276_v39 = vmul.f32 %v465_v38, %v268_v37 }
  0xfc   : > { %466 = vlog2.f32 %v276_v39 }
 0x109   : > { %v467_v40 = vpop.eup %466 }
 0x10a   : > { %v278_v41 = vmul.f32 0.6931472, %v467_v40 }
 0x10c   : > { %v279_v42 = vmul.f32 -4.3429446, %v278_v41 }
 0x10e   : > { %280 = vst.msk [vmem:[%s219_s7] sm:$0xff] %vm224_vm0, %v279_v42 }
 0x10f PF: > { %s18_s14 = sadd.s32 1, %s578_s14   ;;  %s738_s9 = smov %s562_s10 }
 0x110   : > { %p15_p9 = scmp.ge.s32.totalorder %s18_s14, 4   ;;  %s739_s10 = smov %s566_s11 }
 0x111   : > { %s740_s11 = smov %s647_s21  ;;  %s741_s12 = smov %s574_s13 }
 0x112   : > { %s742_s13 = smov %s744_s16  ;;  %17 = sbr.rel (!%p15_p9) target bundleno = 6 (0x6), region = 89 }
 0x117   :  { %300 = vsyncpa [#allocation6], 1 }
 0x118   :  { %302 = vsyncpa [#allocation6 + $0x1], 1 }
 0x119   :  { %303 = vsyncpa [#allocation8], 1 }
 0x11a   :  { %305 = vsyncpa [#allocation8 + $0x1], 1 }

</bundles_post_ra>
